<compile_context>
chip_gen: v7x
topology: tpu7x:2x2x1
jax: 0.10.0
libtpu: 0.0.40
codegen_flags: <defaults>
</compile_context>

<pallas_src>
import functools

import jax
import jax.numpy as jnp
from jax import lax
from jax.experimental import pallas as pl
from jax.experimental.pallas import tpu as pltpu


def _se_kernel(x_ref, w1_ref, w2_ref, o_ref, *, inv_hw):
    """One batch block.

    x_ref : (Bt, C, HW)  -- C on sublanes, HW on lanes.
    w1_ref: (Cr, C)      -- PyTorch nn.Linear(C, Cr, bias=False) weight.
    w2_ref: (C, Cr)      -- PyTorch nn.Linear(Cr, C, bias=False) weight.
    o_ref : (Bt, C, HW)
    """
    # ---- squeeze: global average pool over the spatial (lane) axis.
    mean = jnp.sum(x_ref[...], axis=-1) * inv_hw                     # (Bt, C)

    # ---- excite: fc1 (no bias) + ReLU, fc2 (no bias) + sigmoid.
    # NT matmuls: contract the shared C / Cr axis directly against the
    # PyTorch-layout weights (no transposed copies anywhere).
    h = lax.dot_general(mean, w1_ref[...],
                        dimension_numbers=(((1,), (1,)), ((), ())),
                        preferred_element_type=jnp.float32)          # (Bt, Cr)
    h = jnp.maximum(h, 0.0)
    z = lax.dot_general(h, w2_ref[...],
                        dimension_numbers=(((1,), (1,)), ((), ())),
                        preferred_element_type=jnp.float32)          # (Bt, C)
    gate = 1.0 / (1.0 + jnp.exp(-z))                                 # exact sigmoid (tiny)

    # ---- scale: broadcast the per-(sample, channel) gate over all pixels.
    # Re-read x_ref here (instead of reusing a value captured before the
    # reduction) so the multiply streams from VMEM.
    o_ref[...] = x_ref[...] * gate[:, :, None].astype(o_ref.dtype)


def se_block(x, w1, w2, *, vmem_budget_bytes=None):
    """Squeeze-and-Excitation block (PyTorch SE_Block forward).

    Args:
      x:  (B, C, H, W) float32, NCHW exactly like the PyTorch module.
      w1: (C//r, C) weight of nn.Linear(C, C//r, bias=False)  (PyTorch layout).
      w2: (C, C//r) weight of nn.Linear(C//r, C, bias=False)  (PyTorch layout).
    Returns:
      (B, C, H, W) float32: x scaled per-channel by the SE gate.
    """
    B, C, H, W = x.shape
    Cr = w1.shape[0]
    HW = H * W

    # Free view: NCHW -> (B, C, HW). No transpose, no extra HBM traffic.
    # NOTE (v5e guardrail): the stored last dim is HW; keep it a multiple of
    # 128 for unmasked stores on real shapes (256 here -> already lane-dense).
    x_flat = x.reshape(B, C, HW)

    # --- generation-aware sizing ------------------------------------------
    try:
        is_v7x = "v7" in jax.devices()[0].device_kind.lower()
    except Exception:  # pragma: no cover - defensive, e.g. interpret mode
        is_v7x = False

    if vmem_budget_bytes is None:
        # v7x: 64 MiB physical VMEM; v5e/v6e: 128 MiB.
        vmem_budget_bytes = (24 << 20) if is_v7x else (48 << 20)

    bytes_per_sample = C * HW * x.dtype.itemsize
    # input + output blocks, each double-buffered -> ~4x block bytes resident.
    bt = max(1, min(B, vmem_budget_bytes // (4 * bytes_per_sample)))
    while B % bt:                      # keep the grid exact (no ragged block)
        bt -= 1
    if is_v7x and B >= 2 and (B // bt) < 2:
        # Make sure there are >= 2 grid steps so CORE_PARALLEL has work for
        # both TensorCores.
        bt = max(1, B // 2)
        while B % bt:
            bt -= 1
    num_blocks = B // bt

    block_bytes = bt * bytes_per_sample
    weight_bytes = (w1.size + w2.size) * 4
    vmem_need = 4 * block_bytes + 4 * weight_bytes + (1 << 20)
    vmem_cap = (56 << 20) if is_v7x else (100 << 20)
    vmem_limit = int(min(max(vmem_need, 32 << 20), vmem_cap))

    if is_v7x and num_blocks >= 2:
        dim_sem = (pltpu.CORE_PARALLEL,)   # really split batch across the 2 TCs
    else:
        dim_sem = ("parallel",)            # no-op on single-TC v5e/v6e

    kernel = functools.partial(_se_kernel, inv_hw=1.0 / HW)

    out = pl.pallas_call(
        kernel,
        grid=(num_blocks,),
        in_specs=[
            pl.BlockSpec((bt, C, HW), lambda b: (b, 0, 0)),
            pl.BlockSpec((Cr, C), lambda b: (0, 0)),
            pl.BlockSpec((C, Cr), lambda b: (0, 0)),
        ],
        out_specs=pl.BlockSpec((bt, C, HW), lambda b: (b, 0, 0)),
        out_shape=jax.ShapeDtypeStruct((B, C, HW), x.dtype),
        compiler_params=pltpu.CompilerParams(
            dimension_semantics=dim_sem,
            vmem_limit_bytes=vmem_limit),
    )(x_flat, w1, w2)

    # Free view back to NCHW (same memory layout).
    return out.reshape(B, C, H, W)


def _se_reference(x, w1, w2):
    """Pure-JAX mirror of the PyTorch SE_Block forward (for verification)."""
    y = jnp.mean(x, axis=(2, 3))                  # AdaptiveAvgPool2d(1) -> (B, C)
    y = jnp.maximum(y @ w1.T, 0.0)                # Linear + ReLU        -> (B, Cr)
    y = jax.nn.sigmoid(y @ w2.T)                  # Linear + Sigmoid     -> (B, C)
    return x * y[:, :, None, None]


if __name__ == "__main__":
    key = jax.random.PRNGKey(0)
    kx, k1, k2 = jax.random.split(key, 3)

    B, C, H, W = 2, 128, 16, 16                   # SE_Block(ch_in=128, reduction=4)
    reduction = 4
    Cr = C // reduction

    x = jax.random.normal(kx, (B, C, H, W), dtype=jnp.float32)
    w1 = 0.1 * jax.random.normal(k1, (Cr, C), dtype=jnp.float32)
    w2 = 0.1 * jax.random.normal(k2, (C, Cr), dtype=jnp.float32)

    out = jax.jit(se_block)(x, w1, w2)
    jax.block_until_ready(out)

    ref = _se_reference(x, w1, w2)
    assert out.shape == (B, C, H, W)
    err = float(jnp.max(jnp.abs(out - ref)))
    assert err < 1e-3, err                        # exact sigmoid -> tight tolerance
    print("KERNEL_OK")
</pallas_src>

<mosaic_0001>
module attributes {stable_mosaic.version = 11 : i64} {
  func.func @_se_kernel(%arg0: i32, %arg1: memref<2x128x256xf32, #tpu.memory_space<vmem>>, %arg2: memref<32x128xf32, #tpu.memory_space<vmem>>, %arg3: memref<128x32xf32, #tpu.memory_space<vmem>>, %arg4: memref<2x128x256xf32, #tpu.memory_space<vmem>>) attributes {dimension_semantics = [#tpu.dimension_semantics<parallel>], iteration_bounds = array<i64: 1>, scalar_prefetch = 0 : i64, scratch_operands = 0 : i64, tpu.core_type = #tpu.core_type<tc>, window_params = [{transform_indices = @transform_0, window_bounds = array<i64: 2, 128, 256>}, {pipeline_mode = #tpu.pipeline_mode<synchronous>, transform_indices = @transform_1, window_bounds = array<i64: 32, 128>}, {pipeline_mode = #tpu.pipeline_mode<synchronous>, transform_indices = @transform_2, window_bounds = array<i64: 128, 32>}, {transform_indices = @transform_3, window_bounds = array<i64: 2, 128, 256>}]} {
    %c0 = arith.constant 0 : index
    %c0_0 = arith.constant 0 : index
    %c0_1 = arith.constant 0 : index
    %0 = vector.load %arg1[%c0, %c0_0, %c0_1] : memref<2x128x256xf32, #tpu.memory_space<vmem>>, vector<2x128x256xf32>
    %cst = arith.constant dense<0.000000e+00> : vector<2x128xf32>
    %1 = vector.multi_reduction <add>, %0, %cst [2] : vector<2x128x256xf32> to vector<2x128xf32>
    %cst_2 = arith.constant 3.906250e-03 : f32
    %2 = vector.broadcast %cst_2 : f32 to vector<2x128xf32>
    %3 = arith.mulf %1, %2 : vector<2x128xf32>
    %c0_3 = arith.constant 0 : index
    %c0_4 = arith.constant 0 : index
    %4 = vector.load %arg2[%c0_3, %c0_4] : memref<32x128xf32, #tpu.memory_space<vmem>>, vector<32x128xf32>
    %cst_5 = arith.constant dense<0.000000e+00> : vector<2x32xf32>
    %5 = tpu.matmul %3, %4, %cst_5 {dimension_numbers = #tpu.dot_dimension_numbers<[1], [1], [0], [0], [0, 0, 1, 0], [], []>} : vector<2x128xf32>, vector<32x128xf32>, vector<2x32xf32> -> vector<2x32xf32>
    %cst_6 = arith.constant 0.000000e+00 : f32
    %6 = vector.broadcast %cst_6 : f32 to vector<2x32xf32>
    %7 = arith.maximumf %5, %6 : vector<2x32xf32>
    %c0_7 = arith.constant 0 : index
    %c0_8 = arith.constant 0 : index
    %8 = vector.load %arg3[%c0_7, %c0_8] : memref<128x32xf32, #tpu.memory_space<vmem>>, vector<128x32xf32>
    %cst_9 = arith.constant dense<0.000000e+00> : vector<2x128xf32>
    %9 = tpu.matmul %7, %8, %cst_9 {dimension_numbers = #tpu.dot_dimension_numbers<[1], [1], [0], [0], [0, 0, 1, 0], [], []>} : vector<2x32xf32>, vector<128x32xf32>, vector<2x128xf32> -> vector<2x128xf32>
    %cst_10 = arith.constant 0.000000e+00 : f32
    %10 = vector.broadcast %cst_10 : f32 to vector<2x128xf32>
    %11 = arith.subf %10, %9 : vector<2x128xf32>
    %12 = math.exp %11 : vector<2x128xf32>
    %cst_11 = arith.constant 1.000000e+00 : f32
    %13 = vector.broadcast %cst_11 : f32 to vector<2x128xf32>
    %14 = arith.addf %13, %12 : vector<2x128xf32>
    %cst_12 = arith.constant 1.000000e+00 : f32
    %15 = vector.broadcast %cst_12 : f32 to vector<2x128xf32>
    %16 = arith.divf %15, %14 : vector<2x128xf32>
    %c0_13 = arith.constant 0 : index
    %c0_14 = arith.constant 0 : index
    %c0_15 = arith.constant 0 : index
    %17 = vector.load %arg1[%c0_13, %c0_14, %c0_15] : memref<2x128x256xf32, #tpu.memory_space<vmem>>, vector<2x128x256xf32>
    %18 = vector.shape_cast %16 : vector<2x128xf32> to vector<2x128x1xf32>
    %19 = vector.broadcast %18 : vector<2x128x1xf32> to vector<2x128x256xf32>
    %20 = arith.mulf %17, %19 : vector<2x128x256xf32>
    %c0_16 = arith.constant 0 : index
    %c0_17 = arith.constant 0 : index
    %c0_18 = arith.constant 0 : index
    %21 = vector.load %arg4[%c0_16, %c0_17, %c0_18] : memref<2x128x256xf32, #tpu.memory_space<vmem>>, vector<2x128x256xf32>
    tpu.vector_store %arg4[%c0_16, %c0_17, %c0_18], %20 {strides = array<i32>} : memref<2x128x256xf32, #tpu.memory_space<vmem>>, vector<2x128x256xf32>,
    return
  }
  func.func @transform_0(%arg0: i32) -> (i32, i32, i32) {
    %c0_i32 = arith.constant 0 : i32
    %c0_i32_0 = arith.constant 0 : i32
    %c0_i32_1 = arith.constant 0 : i32
    return %arg0, %c0_i32, %c0_i32_0 : i32, i32, i32
  }
  func.func @transform_1(%arg0: i32) -> (i32, i32) {
    %c0_i32 = arith.constant 0 : i32
    %c0_i32_0 = arith.constant 0 : i32
    %c0_i32_1 = arith.constant 0 : i32
    return %c0_i32, %c0_i32_0 : i32, i32
  }
  func.func @transform_2(%arg0: i32) -> (i32, i32) {
    %c0_i32 = arith.constant 0 : i32
    %c0_i32_0 = arith.constant 0 : i32
    %c0_i32_1 = arith.constant 0 : i32
    return %c0_i32, %c0_i32_0 : i32, i32
  }
  func.func @transform_3(%arg0: i32) -> (i32, i32, i32) {
    %c0_i32 = arith.constant 0 : i32
    %c0_i32_0 = arith.constant 0 : i32
    %c0_i32_1 = arith.constant 0 : i32
    return %arg0, %c0_i32, %c0_i32_0 : i32, i32, i32
  }
}

</mosaic_0001>

<bundles_post_ra>
// kernel: se_block.1
= control target key start
LH: loop header
LB: loop body
LE: loop exit
PB: predicated region body
PF: predicated region fallthrough
CT: control target
= control target key end

     0   :  { %vm1047_vm0 = vmmov 0   ;;  %vm522_vm1 = vcmask 261120   ;;  %vm253_vm3 = vcmask 130112   ;;  %vm260_vm4 = vcmask 195712   ;;  %s1927_s0 = inlined_call_operand.vmem [shape: f32[2,128,256], index: 0, kind: input, shape index: {}]   ;;  %s1928_s1 = inlined_call_operand.vmem [shape: f32[32,128], index: 1, kind: input, shape index: {}]   ;;  %s1929_s2 = inlined_call_operand.vmem [shape: f32[128,32], index: 2, kind: input, shape index: {}]   ;;  %s1930_s3 = inlined_call_operand.vmem [shape: f32[2,128,256], index: 3, kind: output, shape index: {}]  }
   0x1   :  { %v1072_v0 = vld [vmem:[%s1927_s0 + $0x100] sm:$0xff]  ;;  %v1077_v1 = vld [vmem:[%s1927_s0 + $0x108] sm:$0xff]  ;;  %v1094_v5 = vld [vmem:[%s1927_s0 + $0x110] sm:$0xff]  ;;  %vm267_vm5 = vcmask 261312   ;;  %vm274_vm6 = vcmask 326912   ;;  %vm281_vm7 = vcmask 392512  }
   0x2   :  { %1983 = vst [vmem:[#allocation2_spill] sm:$0xff] %v1072_v0  ;;  %1984 = vst [vmem:[#allocation3_spill] sm:$0xff] %v1077_v1  ;;  %v1082_v2 = vld [vmem:[%s1927_s0] sm:$0xff]  ;;  %v126_v3 = vadd.f32 %v1077_v1, %v1072_v0  ;;  %v1089_v4 = vld [vmem:[%s1927_s0 + $0x8] sm:$0xff]  ;;  %vm288_vm8 = vcmask 458112   ;;  %vm295_vm9 = vcmask 523712  }
   0x3   :  { %1985 = vst [vmem:[#allocation4_spill] sm:$0xff] %v1094_v5  ;;  %v1099_v6 = vld [vmem:[%s1927_s0 + $0x118] sm:$0xff]  ;;  %v78_v7 = vadd.f32 %v1089_v4, %v1082_v2  ;;  %v1106_v8 = vld [vmem:[%s1927_s0 + $0x10] sm:$0xff]  ;;  %v1120_v12 = vld [vmem:[%s1927_s0 + $0x120] sm:$0xff]  ;;  %vm302_vm10 = vcmask 589312   ;;  %vm309_vm11 = vcmask 654912  }
   0x4   :  { %1986 = vst [vmem:[#allocation5_spill] sm:$0xff] %v1099_v6  ;;  %v1111_v9 = vld [vmem:[%s1927_s0 + $0x18] sm:$0xff]  ;;  %127 = vadd.xlane.f32.xlu1 %v126_v3  ;;  %v129_v10 = vadd.f32 %v1099_v6, %v1094_v5  ;;  %1987 = vst [vmem:[#allocation6_spill] sm:$0xff] %v1120_v12  ;;  %v1125_v13 = vld [vmem:[%s1927_s0 + $0x128] sm:$0xff]  ;;  %vm316_vm12 = vcmask 720512   ;;  %vm323_vm13 = vcmask 786112  }
   0x5   :  { %79 = vadd.xlane.f32.xlu0 %v78_v7  ;;  %v81_v11 = vadd.f32 %v1111_v9, %v1106_v8  ;;  %1988 = vst [vmem:[#allocation7_spill] sm:$0xff] %v1125_v13  ;;  %v1130_v14 = vld [vmem:[%s1927_s0 + $0x20] sm:$0xff]  ;;  %v1135_v15 = vld [vmem:[%s1927_s0 + $0x28] sm:$0xff]  ;;  %v132_v16 = vadd.f32 %v1125_v13, %v1120_v12  ;;  %v1144_v18 = vld [vmem:[%s1927_s0 + $0x130] sm:$0xff]  ;;  %vm330_vm14 = vcmask 851712   ;;  %vm337_vm15 = vcmask 917312  }
   0x6   :  { %v84_v17 = vadd.f32 %v1135_v15, %v1130_v14  ;;  %1989 = vst [vmem:[#allocation8_spill] sm:$0xff] %v1144_v18  ;;  %v1149_v19 = vld [vmem:[%s1927_s0 + $0x138] sm:$0xff]  ;;  %v1154_v20 = vld [vmem:[%s1927_s0 + $0x30] sm:$0xff]  ;;  %v1168_v24 = vld [vmem:[%s1927_s0 + $0x140] sm:$0xff] }
   0x7   :  { %1990 = vst [vmem:[#allocation9_spill] sm:$0xff] %v1149_v19  ;;  %v1159_v21 = vld [vmem:[%s1927_s0 + $0x38] sm:$0xff]  ;;  %v135_v22 = vadd.f32 %v1149_v19, %v1144_v18  ;;  %1991 = vst [vmem:[#allocation10_spill] sm:$0xff] %v1168_v24  ;;  %v1173_v25 = vld [vmem:[%s1927_s0 + $0x148] sm:$0xff] }
   0x8   :  { %130 = vadd.xlane.f32.xlu1 %v129_v10  ;;  %v87_v23 = vadd.f32 %v1159_v21, %v1154_v20  ;;  %1992 = vst [vmem:[#allocation11_spill] sm:$0xff] %v1173_v25  ;;  %v1178_v26 = vld [vmem:[%s1927_s0 + $0x40] sm:$0xff]  ;;  %v1183_v27 = vld [vmem:[%s1927_s0 + $0x48] sm:$0xff]  ;;  %v138_v28 = vadd.f32 %v1173_v25, %v1168_v24  ;;  %v1192_v30 = vld [vmem:[%s1927_s0 + $0x150] sm:$0xff] }
   0x9   :  { %82 = vadd.xlane.f32.xlu0 %v81_v11  ;;  %v90_v29 = vadd.f32 %v1183_v27, %v1178_v26  ;;  %1993 = vst [vmem:[#allocation12_spill] sm:$0xff] %v1192_v30  ;;  %v1197_v31 = vld [vmem:[%s1927_s0 + $0x158] sm:$0xff]  ;;  %v1202_v32 = vld [vmem:[%s1927_s0 + $0x50] sm:$0xff]  ;;  %v1216_v36 = vld [vmem:[%s1927_s0 + $0x160] sm:$0xff] }
   0xa   :  { %1994 = vst [vmem:[#allocation13_spill] sm:$0xff] %v1197_v31  ;;  %1995 = vst [vmem:[#allocation14_spill] sm:$0xff] %v1202_v32  ;;  %v1207_v33 = vld [vmem:[%s1927_s0 + $0x58] sm:$0xff]  ;;  %v141_v34 = vadd.f32 %v1197_v31, %v1192_v30  ;;  %v1221_v37 = vld [vmem:[%s1927_s0 + $0x168] sm:$0xff] }
   0xb   :  { %1996 = vst [vmem:[#allocation15_spill] sm:$0xff] %v1207_v33  ;;  %v93_v35 = vadd.f32 %v1207_v33, %v1202_v32  ;;  %1997 = vst [vmem:[#allocation16_spill] sm:$0xff] %v1216_v36  ;;  %v1226_v38 = vld [vmem:[%s1927_s0 + $0x60] sm:$0xff]  ;;  %v1231_v39 = vld [vmem:[%s1927_s0 + $0x68] sm:$0xff]  ;;  %v144_v40 = vadd.f32 %v1221_v37, %v1216_v36 }
   0xc   :  { %133 = vadd.xlane.f32.xlu1 %v132_v16  ;;  %1998 = vst [vmem:[#allocation17_spill] sm:$0xff] %v1221_v37  ;;  %v96_v41 = vadd.f32 %v1231_v39, %v1226_v38  ;;  %v1240_v42 = vld [vmem:[%s1927_s0 + $0x170] sm:$0xff]  ;;  %v1245_v43 = vld [vmem:[%s1927_s0 + $0x178] sm:$0xff]  ;;  %v1264_v48 = vld [vmem:[%s1927_s0 + $0x180] sm:$0xff] }
   0xd   :  { %85 = vadd.xlane.f32.xlu0 %v84_v17  ;;  %1999 = vst [vmem:[#allocation18_spill] sm:$0xff] %v1240_v42  ;;  %2000 = vst [vmem:[#allocation19_spill] sm:$0xff] %v1245_v43  ;;  %v1250_v44 = vld [vmem:[%s1927_s0 + $0x70] sm:$0xff]  ;;  %v1255_v45 = vld [vmem:[%s1927_s0 + $0x78] sm:$0xff]  ;;  %v147_v46 = vadd.f32 %v1245_v43, %v1240_v42 }
   0xe   :  { %2001 = vst [vmem:[#allocation20_spill] sm:$0xff] %v1250_v44  ;;  %2002 = vst [vmem:[#allocation21_spill] sm:$0xff] %v1255_v45  ;;  %v99_v47 = vadd.f32 %v1255_v45, %v1250_v44  ;;  %v1269_v49 = vld [vmem:[%s1927_s0 + $0x188] sm:$0xff]  ;;  %v1274_v50 = vld [vmem:[%s1927_s0 + $0x80] sm:$0xff] }
   0xf   :  { %2003 = vst [vmem:[#allocation22_spill] sm:$0xff] %v1264_v48  ;;  %2004 = vst [vmem:[#allocation23_spill] sm:$0xff] %v1269_v49  ;;  %v1279_v51 = vld [vmem:[%s1927_s0 + $0x88] sm:$0xff]  ;;  %v150_v52 = vadd.f32 %v1269_v49, %v1264_v48  ;;  %v1288_v54 = vld [vmem:[%s1927_s0 + $0x190] sm:$0xff] }
  0x10   :  { %136 = vadd.xlane.f32.xlu1 %v135_v22  ;;  %2005 = vst [vmem:[#allocation24_spill] sm:$0xff] %v1274_v50  ;;  %2006 = vst [vmem:[#allocation25_spill] sm:$0xff] %v1279_v51  ;;  %v102_v53 = vadd.f32 %v1279_v51, %v1274_v50  ;;  %v1293_v55 = vld [vmem:[%s1927_s0 + $0x198] sm:$0xff]  ;;  %v1298_v56 = vld [vmem:[%s1927_s0 + $0x90] sm:$0xff] }
  0x11   :  { %88 = vadd.xlane.f32.xlu0 %v87_v23  ;;  %2007 = vst [vmem:[#allocation26_spill] sm:$0xff] %v1288_v54  ;;  %2008 = vst [vmem:[#allocation27_spill] sm:$0xff] %v1293_v55  ;;  %v1303_v57 = vld [vmem:[%s1927_s0 + $0x98] sm:$0xff]  ;;  %v153_v58 = vadd.f32 %v1293_v55, %v1288_v54  ;;  %v1312_v60 = vld [vmem:[%s1927_s0 + $0x1a0] sm:$0xff] }
  0x12   :  { %2009 = vst [vmem:[#allocation28_spill] sm:$0xff] %v1298_v56  ;;  %2010 = vst [vmem:[#allocation29_spill] sm:$0xff] %v1303_v57  ;;  %v105_v59 = vadd.f32 %v1303_v57, %v1298_v56  ;;  %v1317_v61 = vld [vmem:[%s1927_s0 + $0x1a8] sm:$0xff]  ;;  %v1322_v62 = vld [vmem:[%s1927_s0 + $0xa0] sm:$0xff] }
  0x13   :  { %2011 = vst [vmem:[#allocation30_spill] sm:$0xff] %v1312_v60  ;;  %2012 = vst [vmem:[#allocation31_spill] sm:$0xff] %v1317_v61  ;;  %v1327_v63 = vld [vmem:[%s1927_s0 + $0xa8] sm:$0xff]  ;;  %v156_v3 = vadd.f32 %v1317_v61, %v1312_v60  ;;  %v1336_v10 = vld [vmem:[%s1927_s0 + $0x1b0] sm:$0xff] }
  0x14   :  { %139 = vadd.xlane.f32.xlu1 %v138_v28  ;;  %2013 = vst [vmem:[#allocation32_spill] sm:$0xff] %v1322_v62  ;;  %2014 = vst [vmem:[#allocation33_spill] sm:$0xff] %v1327_v63  ;;  %v108_v7 = vadd.f32 %v1327_v63, %v1322_v62  ;;  %v1341_v11 = vld [vmem:[%s1927_s0 + $0x1b8] sm:$0xff]  ;;  %v1346_v16 = vld [vmem:[%s1927_s0 + $0xb0] sm:$0xff] }
  0x15   :  { %91 = vadd.xlane.f32.xlu0 %v90_v29  ;;  %2015 = vst [vmem:[#allocation34_spill] sm:$0xff] %v1336_v10  ;;  %2016 = vst [vmem:[#allocation35_spill] sm:$0xff] %v1341_v11  ;;  %v1351_v17 = vld [vmem:[%s1927_s0 + $0xb8] sm:$0xff]  ;;  %v159_v22 = vadd.f32 %v1341_v11, %v1336_v10  ;;  %v1360_v28 = vld [vmem:[%s1927_s0 + $0x1c0] sm:$0xff] }
  0x16   :  { %2017 = vst [vmem:[#allocation36_spill] sm:$0xff] %v1346_v16  ;;  %2018 = vst [vmem:[#allocation37_spill] sm:$0xff] %v1351_v17  ;;  %v111_v23 = vadd.f32 %v1351_v17, %v1346_v16  ;;  %v1365_v29 = vld [vmem:[%s1927_s0 + $0x1c8] sm:$0xff]  ;;  %v206_v11 = vld [vmem:[%s1928_s1] sm:$0xff] }
  0x17   :  { %2019 = vst [vmem:[#allocation38_spill] sm:$0xff] %v1360_v28  ;;  %2020 = vst [vmem:[#allocation39_spill] sm:$0xff] %v1365_v29  ;;  %v207_v10 = vld [vmem:[%s1928_s1 + $0x8] sm:$0xff] }
  0x18   :  { %142 = vadd.xlane.f32.xlu1 %v141_v34  ;;  %v1370_v34 = vld [vmem:[%s1927_s0 + $0xc0] sm:$0xff]  ;;  %vm1473_vm2 = vmpackc.low %vm522_vm1, %vm522_vm1 }
  0x19   :  { %94 = vadd.xlane.f32.xlu0 %v93_v35  ;;  %2021 = vst [vmem:[#allocation40_spill] sm:$0xff] %v1370_v34  ;;  %v1375_v35 = vld [vmem:[%s1927_s0 + $0xc8] sm:$0xff] }
  0x1a   :  { %2022 = vst [vmem:[#allocation41_spill] sm:$0xff] %v1375_v35 }
  0x1c   :  { %145 = vadd.xlane.f32.xlu1 %v144_v40  ;;  %v162_v40 = vadd.f32 %v1365_v29, %v1360_v28  ;;  %v1002_v29 = vpack.c.bf16 %v207_v10, %v206_v11  ;;  %v1046_v28 = vmov 0.0|0.0   ;;  %v506_v10 = vld [vmem:[%s1929_s2] sm:$0xff]  ;;  %v507_v11 = vld [vmem:[%s1929_s2 + $0x8] sm:$0xff] }
  0x1d   :  { %97 = vadd.xlane.f32.xlu0 %v96_v41  ;;  %v114_v41 = vadd.f32 %v1375_v35, %v1370_v34  ;;  %1001 = vmatprep.subr.bf16.mxu0 %v1046_v28 }
  0x1e   :  { %1007 = vmatprep.subr.bf16.mxu1 %v1046_v28  ;;  %1003 = vmatpush3.bf16.xpose.msra.mxu0 %v1002_v29 }
  0x1f   :  { %1004 = vmatprep.subr.bf16.mxu0 %v1046_v28 }
  0x20   :  { %148 = vadd.xlane.f32.xlu1 %v147_v46  ;;  %v1384_v46 = vld [vmem:[%s1927_s0 + $0x1d0] sm:$0xff] }
  0x21   :  { %100 = vadd.xlane.f32.xlu0 %v99_v47  ;;  %2023 = vst [vmem:[#allocation42_spill] sm:$0xff] %v1384_v46  ;;  %v1389_v47 = vld [vmem:[%s1927_s0 + $0x1d8] sm:$0xff] }
  0x22   :  { %2024 = vst [vmem:[#allocation43_spill] sm:$0xff] %v1389_v47 }
  0x24   :  { %151 = vadd.xlane.f32.xlu1 %v150_v52  ;;  %v1394_v52 = vld [vmem:[%s1927_s0 + $0xd0] sm:$0xff] }
  0x25   :  { %103 = vadd.xlane.f32.xlu0 %v102_v53  ;;  %2025 = vst [vmem:[#allocation44_spill] sm:$0xff] %v1394_v52  ;;  %v1399_v53 = vld [vmem:[%s1927_s0 + $0xd8] sm:$0xff] }
  0x26   :  { %2026 = vst [vmem:[#allocation45_spill] sm:$0xff] %v1399_v53 }
  0x28   :  { %154 = vadd.xlane.f32.xlu1 %v153_v58  ;;  %v165_v58 = vadd.f32 %v1389_v47, %v1384_v46  ;;  %v1432_v47 = vld [vmem:[%s1927_s0 + $0x1f0] sm:$0xff]  ;;  %v1437_v46 = vld [vmem:[%s1927_s0 + $0x1f8] sm:$0xff] }
  0x29   :  { %106 = vadd.xlane.f32.xlu0 %v105_v59  ;;  %v117_v59 = vadd.f32 %v1399_v53, %v1394_v52  ;;  %2031 = vst [vmem:[#allocation50_spill] sm:$0xff] %v1432_v47  ;;  %2032 = vst [vmem:[#allocation51_spill] sm:$0xff] %v1437_v46 }
  0x2c   :  { %157 = vadd.xlane.f32.xlu1 %v156_v3  ;;  %v1408_v3 = vld [vmem:[%s1927_s0 + $0x1e0] sm:$0xff] }
  0x2d   :  { %109 = vadd.xlane.f32.xlu0 %v108_v7  ;;  %2027 = vst [vmem:[#allocation46_spill] sm:$0xff] %v1408_v3  ;;  %v1413_v7 = vld [vmem:[%s1927_s0 + $0x1e8] sm:$0xff] }
  0x2e   :  { %2028 = vst [vmem:[#allocation47_spill] sm:$0xff] %v1413_v7 }
  0x30   :  { %160 = vadd.xlane.f32.xlu1 %v159_v22  ;;  %v1418_v22 = vld [vmem:[%s1927_s0 + $0xe0] sm:$0xff] }
  0x31   :  { %112 = vadd.xlane.f32.xlu0 %v111_v23  ;;  %2029 = vst [vmem:[#allocation48_spill] sm:$0xff] %v1418_v22  ;;  %v1423_v23 = vld [vmem:[%s1927_s0 + $0xe8] sm:$0xff] }
  0x32   :  { %2030 = vst [vmem:[#allocation49_spill] sm:$0xff] %v1423_v23 }
  0x34   :  { %163 = vadd.xlane.f32.xlu1 %v162_v40  ;;  %v168_v40 = vadd.f32 %v1413_v7, %v1408_v3  ;;  %v171_v7 = vadd.f32 %v1437_v46, %v1432_v47 }
  0x35   :  { %115 = vadd.xlane.f32.xlu0 %v114_v41  ;;  %v120_v41 = vadd.f32 %v1423_v23, %v1418_v22 }
  0x38   :  { %166 = vadd.xlane.f32.xlu1 %v165_v58  ;;  %v1442_v58 = vld [vmem:[%s1927_s0 + $0xf0] sm:$0xff] }
  0x39   :  { %118 = vadd.xlane.f32.xlu0 %v117_v59  ;;  %2033 = vst [vmem:[#allocation52_spill] sm:$0xff] %v1442_v58  ;;  %v1447_v59 = vld [vmem:[%s1927_s0 + $0xf8] sm:$0xff] }
  0x3a   :  { %2034 = vst [vmem:[#allocation53_spill] sm:$0xff] %v1447_v59  ;;  %v123_v3 = vadd.f32 %v1447_v59, %v1442_v58 }
  0x3c   :  { %169 = vadd.xlane.f32.xlu1 %v168_v40  ;;  %v208_v40 = vld [vmem:[%s1928_s1 + $0x10] sm:$0xff] }
  0x3d   :  { %121 = vadd.xlane.f32.xlu0 %v120_v41  ;;  %v1048_v41 = vmov 0.0  }
  0x3e   :  { %963 = vmatprep.mubr.msk.f32.mxu0 %vm1047_vm0, %v1048_v41  ;;  %998 = vmatprep.mubr.msk.f32.mxu1 %vm1047_vm0, %v1048_v41  ;;  %vm344_vm0 = vcmask 982912  }
  0x40   :  { %172 = vadd.xlane.f32.xlu1 %v171_v7 }
  0x41   :  { %124 = vadd.xlane.f32.xlu0 %v123_v3  ;;  %v209_v3 = vld [vmem:[%s1928_s1 + $0x18] sm:$0xff] }
  0x42   :  { %v1005_v7 = vpack.c.bf16 %v209_v3, %v208_v40  ;;  %v1008_v40 = vpack.c.bf16 %v507_v11, %v506_v10  ;;  %v508_v3 = vld [vmem:[%s1929_s2 + $0x10] sm:$0xff]  ;;  %v510_v10 = vld [vmem:[%s1929_s2 + $0x20] sm:$0xff]  ;;  %v511_v11 = vld [vmem:[%s1929_s2 + $0x28] sm:$0xff] }
  0x44   :  { %1006 = vmatpush3.bf16.xpose.msra.mxu0 %v1005_v7  ;;  %1010 = vmatpush3.bf16.xpose.msk.msra.mxu1 %vm1473_vm2, %v1008_v40  ;;  %v509_v7 = vld [vmem:[%s1929_s2 + $0x18] sm:$0xff]  ;;  %v1016_v40 = vpack.c.bf16 %v511_v11, %v510_v10  ;;  %v514_v10 = vld [vmem:[%s1929_s2 + $0x40] sm:$0xff]  ;;  %v515_v11 = vld [vmem:[%s1929_s2 + $0x48] sm:$0xff] }
  0x45   :  { %1011 = vmatprep.subr.bf16.mxu1 %v1046_v28  ;;  %v1012_v41 = vpack.c.bf16 %v509_v7, %v508_v3  ;;  %v512_v3 = vld [vmem:[%s1929_s2 + $0x30] sm:$0xff]  ;;  %v513_v7 = vld [vmem:[%s1929_s2 + $0x38] sm:$0xff] }
  0x4c   :  { %1014 = vmatpush3.bf16.xpose.msk.msra.mxu1 %vm1473_vm2, %v1012_v41  ;;  %v1020_v41 = vpack.c.bf16 %v513_v7, %v512_v3  ;;  %v516_v3 = vld [vmem:[%s1929_s2 + $0x50] sm:$0xff]  ;;  %v517_v7 = vld [vmem:[%s1929_s2 + $0x58] sm:$0xff] }
  0x4d   :  { %1015 = vmatprep.subr.bf16.mxu1 %v1046_v28 }
  0x54   :  { %1018 = vmatpush3.bf16.xpose.msk.msra.mxu1 %vm1473_vm2, %v1016_v40  ;;  %v1024_v40 = vpack.c.bf16 %v515_v11, %v514_v10  ;;  %v518_v10 = vld [vmem:[%s1929_s2 + $0x60] sm:$0xff]  ;;  %v519_v11 = vld [vmem:[%s1929_s2 + $0x68] sm:$0xff] }
  0x55   :  { %1019 = vmatprep.subr.bf16.mxu1 %v1046_v28 }
  0x5c   :  { %1022 = vmatpush3.bf16.xpose.msk.msra.mxu1 %vm1473_vm2, %v1020_v41  ;;  %v1028_v41 = vpack.c.bf16 %v517_v7, %v516_v3  ;;  %v520_v3 = vld [vmem:[%s1929_s2 + $0x70] sm:$0xff]  ;;  %v521_v7 = vld [vmem:[%s1929_s2 + $0x78] sm:$0xff] }
  0x5d   :  { %1023 = vmatprep.subr.bf16.mxu1 %v1046_v28 }
  0x64   :  { %1026 = vmatpush3.bf16.xpose.msk.msra.mxu1 %vm1473_vm2, %v1024_v40  ;;  %v1032_v40 = vpack.c.bf16 %v519_v11, %v518_v10 }
  0x65   :  { %1027 = vmatprep.subr.bf16.mxu1 %v1046_v28 }
  0x6c   :  { %1030 = vmatpush3.bf16.xpose.msk.msra.mxu1 %vm1473_vm2, %v1028_v41  ;;  %v1036_v41 = vpack.c.bf16 %v521_v7, %v520_v3  ;;  %v242_v3 = vlaneseq }
  0x6d   :  { %1031 = vmatprep.subr.bf16.mxu1 %v1046_v28 }
  0x6e   :  { %v1545_v31 = vshrl.u32 %v242_v3, 7 }
  0x74   :  { %1034 = vmatpush3.bf16.xpose.msk.msra.mxu1 %vm1473_vm2, %v1032_v40 }
  0x75   :  { %1035 = vmatprep.subr.bf16.mxu1 %v1046_v28 }
  0x7c   :  { %1038 = vmatpush3.bf16.xpose.msk.msra.mxu1 %vm1473_vm2, %v1036_v41  ;;  %v243_v41 = vand.u32 127, %v242_v3  ;;  %vm351_vm2 = vcmask 1048512  }
  0x7e   :  { %v248_v30 = vadd.s32 4294967288, %v243_v41  ;;  %v255_v37 = vadd.s32 4294967280, %v243_v41  ;;  %v262_v19 = vadd.s32 4294967272, %v243_v41  ;;  %v269_v18 = vadd.s32 4294967264, %v243_v41 }
  0x7f   :  { %v276_v24 = vadd.s32 4294967256, %v243_v41  ;;  %v283_v6 = vadd.s32 4294967248, %v243_v41  ;;  %v290_v5 = vadd.s32 4294967240, %v243_v41  ;;  %v1552_v13 = vsub.s32 %v243_v41, %v1545_v31 }
  0x80   :  { %v297_v12 = vadd.s32 4294967232, %v243_v41  ;;  %v304_v59 = vadd.s32 4294967224, %v243_v41  ;;  %v311_v58 = vadd.s32 4294967216, %v243_v41  ;;  %v251_v3 = vsub.s32 %v248_v30, %v1545_v31 }
  0x81   :  { %v1556_v1 = vsub.s32 %v255_v37, %v1545_v31  ;;  %v318_v53 = vadd.s32 4294967208, %v243_v41  ;;  %v1561_v52 = vsub.s32 %v262_v19, %v1545_v31  ;;  %v1564_v23 = vsub.s32 %v269_v18, %v1545_v31 }
  0x82   :  { %v325_v17 = vadd.s32 4294967200, %v243_v41  ;;  %v1569_v30 = vsub.s32 %v276_v24, %v1545_v31  ;;  %v1572_v37 = vsub.s32 %v283_v6, %v1545_v31  ;;  %v1575_v16 = vsub.s32 %v290_v5, %v1545_v31 }
  0x83   :  { %v332_v35 = vadd.s32 4294967192, %v243_v41  ;;  %v1578_v19 = vsub.s32 %v297_v12, %v1545_v31  ;;  %v1581_v18 = vsub.s32 %v304_v59, %v1545_v31  ;;  %v1584_v57 = vsub.s32 %v311_v58, %v1545_v31 }
  0x84   :  { %v1587_v63 = vsub.s32 %v318_v53, %v1545_v31  ;;  %v339_v5 = vadd.s32 4294967184, %v243_v41  ;;  %v1590_v12 = vsub.s32 %v325_v17, %v1545_v31  ;;  %v346_v53 = vadd.s32 4294967176, %v243_v41 }
  0x85   :  { %v1593_v58 = vsub.s32 %v332_v35, %v1545_v31 }
  0x86   :  { %v1598_v17 = vsub.s32 %v339_v5, %v1545_v31 }
  0x91   :  { %v128_v46 = vpop.xlane.xlu1 %127 }
  0x92   :  { %v80_v47 = vpop.xlane.xlu0 %79  ;;  %v190_v62 = vmul.f32 0.00390625, %v128_v46 }
  0x93   :  { %v174_v59 = vmul.f32 0.00390625, %v80_v47 }
  0x94   :  { %v356_v47 = vrot.slane %v190_v62, %v1552_v13 }
  0x95   :  { %v131_v55 = vpop.xlane.xlu1 %130 }
  0x96   :  { %v83_v10 = vpop.xlane.xlu0 %82  ;;  %v191_v34 = vmul.f32 0.00390625, %v131_v55 }
  0x97   :  { %v175_v24 = vmul.f32 0.00390625, %v83_v10 }
  0x98   :  { %v360_v10 = vrot.slane %v191_v34, %v251_v3 }
  0x99   :  { %v134_v11 = vpop.xlane.xlu1 %133  ;;  %v252_v32 = vrot.slane %v175_v24, %v251_v3 }
  0x9a   :  { %v86_v54 = vpop.xlane.xlu0 %85  ;;  %v192_v56 = vmul.f32 0.00390625, %v134_v11  ;;  %v361_v41 = vsel %vm253_vm3, %v360_v10, %v356_v47 }
  0x9b   :  { %v176_v55 = vmul.f32 0.00390625, %v86_v54 }
  0x9c   :  { %v365_v46 = vrot.slane %v192_v56, %v1556_v1 }
  0x9d   :  { %v137_v40 = vpop.xlane.xlu1 %136 }
  0x9e   :  { %v89_v28 = vpop.xlane.xlu0 %88  ;;  %v193_v45 = vmul.f32 0.00390625, %v137_v40 }
  0x9f   :  { %v177_v51 = vmul.f32 0.00390625, %v89_v28 }
  0xa0   :  { %v370_v35 = vrot.slane %v193_v45, %v1561_v52  ;;  %v1612_v45 = vsub.s32 %v346_v53, %v1545_v31 }
  0xa1   :  { %v140_v61 = vpop.xlane.xlu1 %139  ;;  %v266_v56 = vrot.slane %v177_v51, %v1561_v52 }
  0xa2   :  { %v92_v60 = vpop.xlane.xlu0 %91  ;;  %v194_v50 = vmul.f32 0.00390625, %v140_v61  ;;  %v259_v61 = vrot.slane %v176_v55, %v1556_v1 }
  0xa3   :  { %v178_v11 = vmul.f32 0.00390625, %v92_v60  ;;  %v247_v60 = vrot.slane %v174_v59, %v1552_v13  ;;  %v366_v13 = vsel %vm260_vm4, %v365_v46, %v361_v41 }
  0xa5   :  { %v143_v43 = vpop.xlane.xlu1 %142  ;;  %v273_v62 = vrot.slane %v178_v11, %v1564_v23 }
  0xa6   :  { %v1535_v42 = vpop.xlane.xlu0 %94  ;;  %v195_v33 = vmul.f32 0.00390625, %v143_v43 }
  0xa7   :  { %v179_v54 = vmul.f32 0.00390625, %v1535_v42  ;;  %v375_v42 = vrot.slane %v194_v50, %v1564_v23  ;;  %v371_v23 = vsel %vm267_vm5, %v370_v35, %v366_v13 }
  0xa8   :  { %v380_v1 = vrot.slane %v195_v33, %v1569_v30 }
  0xa9   :  { %v1537_v49 = vpop.xlane.xlu1 %145  ;;  %v280_v51 = vrot.slane %v179_v54, %v1569_v30  ;;  %v376_v5 = vsel %vm274_vm6, %v375_v42, %v371_v23 }
  0xaa   :  { %v1539_v48 = vpop.xlane.xlu0 %97  ;;  %v196_v34 = vmul.f32 0.00390625, %v1537_v49  ;;  %v254_v49 = vsel %vm253_vm3, %v252_v32, %v247_v60  ;;  %v381_v59 = vsel %vm281_vm7, %v380_v1, %v376_v5  ;;  %vm432_vm3 = vcmask 1041409  }
  0xab   :  { %v180_v28 = vmul.f32 0.00390625, %v1539_v48  ;;  %v261_v52 = vsel %vm260_vm4, %v259_v61, %v254_v49 }
  0xac   :  { %v385_v33 = vrot.slane %v196_v34, %v1572_v37  ;;  %v268_v32 = vsel %vm267_vm5, %v266_v56, %v261_v52 }
  0xad   :  { %v1541_v7 = vpop.xlane.xlu1 %148  ;;  %v287_v30 = vrot.slane %v180_v28, %v1572_v37  ;;  %v275_v55 = vsel %vm274_vm6, %v273_v62, %v268_v32 }
  0xae   :  { %v1543_v29 = vpop.xlane.xlu0 %100  ;;  %v197_v50 = vmul.f32 0.00390625, %v1541_v7 }
  0xaf   :  { %v181_v3 = vmul.f32 0.00390625, %v1543_v29  ;;  %v282_v29 = vsel %vm281_vm7, %v280_v51, %v275_v55 }
  0xb0   :  { %v390_v53 = vrot.slane %v197_v50, %v1575_v16 }
  0xb1   :  { %v1547_v36 = vpop.xlane.xlu1 %151  ;;  %v294_v47 = vrot.slane %v181_v3, %v1575_v16 }
  0xb2   :  { %v1549_v25 = vpop.xlane.xlu0 %103  ;;  %v198_v7 = vmul.f32 0.00390625, %v1547_v36  ;;  %v386_v36 = vsel %vm288_vm8, %v385_v33, %v381_v59 }
  0xb3   :  { %v182_v10 = vmul.f32 0.00390625, %v1549_v25  ;;  %v391_v41 = vsel %vm295_vm9, %v390_v53, %v386_v36 }
  0xb4   :  { %v395_v25 = vrot.slane %v198_v7, %v1578_v19 }
  0xb5   :  { %v1558_v0 = vpop.xlane.xlu1 %154  ;;  %v301_v42 = vrot.slane %v182_v10, %v1578_v19 }
  0xb6   :  { %v1566_v22 = vpop.xlane.xlu0 %106  ;;  %v199_v11 = vmul.f32 0.00390625, %v1558_v0  ;;  %v289_v0 = vsel %vm288_vm8, %v287_v30, %v282_v29  ;;  %v396_v51 = vsel %vm302_vm10, %v395_v25, %v391_v41 }
  0xb7   :  { %v183_v46 = vmul.f32 0.00390625, %v1566_v22  ;;  %v296_v1 = vsel %vm295_vm9, %v294_v47, %v289_v0 }
  0xb8   :  { %v400_v22 = vrot.slane %v199_v11, %v1581_v18 }
  0xb9   :  { %v158_v6 = vpop.xlane.xlu1 %157  ;;  %v308_v16 = vrot.slane %v183_v46, %v1581_v18  ;;  %v303_v18 = vsel %vm302_vm10, %v301_v42, %v296_v1 }
  0xba   :  { %v110_v44 = vpop.xlane.xlu0 %109  ;;  %v200_v54 = vmul.f32 0.00390625, %v158_v6  ;;  %v401_v23 = vsel %vm309_vm11, %v400_v22, %v396_v51 }
  0xbb   :  { %v184_v61 = vmul.f32 0.00390625, %v110_v44 }
  0xbc   :  { %v405_v44 = vrot.slane %v200_v54, %v1584_v57 }
  0xbd   :  { %v161_v40 = vpop.xlane.xlu1 %160  ;;  %v315_v49 = vrot.slane %v184_v61, %v1584_v57  ;;  %v310_v57 = vsel %vm309_vm11, %v308_v16, %v303_v18 }
  0xbe   :  { %v113_v43 = vpop.xlane.xlu0 %112  ;;  %v201_v35 = vmul.f32 0.00390625, %v161_v40 }
  0xbf   :  { %v185_v60 = vmul.f32 0.00390625, %v113_v43  ;;  %v317_v30 = vsel %vm316_vm12, %v315_v49, %v310_v57 }
  0xc0   :  { %v410_v43 = vrot.slane %v201_v35, %v1587_v63 }
  0xc1   :  { %v164_v48 = vpop.xlane.xlu1 %163  ;;  %v322_v50 = vrot.slane %v185_v60, %v1587_v63 }
  0xc2   :  { %v116_v24 = vpop.xlane.xlu0 %115  ;;  %v202_v56 = vmul.f32 0.00390625, %v164_v48 }
  0xc3   :  { %v186_v6 = vmul.f32 0.00390625, %v116_v24  ;;  %v406_v24 = vsel %vm316_vm12, %v405_v44, %v401_v23  ;;  %v719_v44 = vsub.s32 1, %v1545_v31  ;;  %v2039_v23 = vld [vmem:[#allocation24_spill] sm:$0xff] }
  0xc4   :  { %v415_v48 = vrot.slane %v202_v56, %v1590_v12  ;;  %v411_v7 = vsel %vm323_vm13, %v410_v43, %v406_v24 }
  0xc5   :  { %v167_v37 = vpop.xlane.xlu1 %166  ;;  %v329_v33 = vrot.slane %v186_v6, %v1590_v12  ;;  %v324_v12 = vsel %vm323_vm13, %v322_v50, %v317_v30  ;;  %v2042_v30 = vld [vmem:[#allocation21_spill] sm:$0xff] }
  0xc6   :  { %v119_v34 = vpop.xlane.xlu0 %118  ;;  %v203_v28 = vmul.f32 0.00390625, %v167_v37  ;;  %v416_v11 = vsel %vm330_vm14, %v415_v48, %v411_v7 }
  0xc7   :  { %v187_v40 = vmul.f32 0.00390625, %v119_v34  ;;  %v331_v53 = vsel %vm330_vm14, %v329_v33, %v324_v12 }
  0xc8   :  { %v420_v3 = vrot.slane %v203_v28, %v1593_v58  ;;  %v652_v28 = vsub.s32 0, %v1545_v31 }
  0xc9   :  { %v170_v62 = vpop.xlane.xlu1 %169  ;;  %v336_v32 = vrot.slane %v187_v40, %v1593_v58 }
  0xca   :  { %v204_v13 = vmul.f32 0.00390625, %v170_v62  ;;  %v122_v19 = vpop.xlane.xlu0 %121  ;;  %v421_v58 = vsel %vm337_vm15, %v420_v3, %v416_v11  ;;  %v2040_v3 = vld [vmem:[#allocation25_spill] sm:$0xff] }
  0xcb   :  { %v188_v52 = vmul.f32 0.00390625, %v122_v19  ;;  %v338_v54 = vsel %vm337_vm15, %v336_v32, %v331_v53  ;;  %v2045_v53 = vld [vmem:[#allocation28_spill] sm:$0xff] }
  0xcc   :  { %v425_v5 = vrot.slane %v204_v13, %v1598_v17 }
  0xcd   :  { %v173_v63 = vpop.xlane.xlu1 %172  ;;  %v343_v55 = vrot.slane %v188_v52, %v1598_v17  ;;  %v2038_v52 = vld [vmem:[#allocation15_spill] sm:$0xff] }
  0xce   :  { %v205_v59 = vmul.f32 0.00390625, %v173_v63  ;;  %v125_v10 = vpop.xlane.xlu0 %124  ;;  %v426_v17 = vsel %vm344_vm0, %v425_v5, %v421_v58  ;;  %v2041_v5 = vld [vmem:[#allocation20_spill] sm:$0xff] }
  0xcf   :  { %v189_v29 = vmul.f32 0.00390625, %v125_v10  ;;  %v345_v36 = vsel %vm344_vm0, %v343_v55, %v338_v54  ;;  %v2043_v55 = vld [vmem:[#allocation32_spill] sm:$0xff]  ;;  %v2044_v10 = vld [vmem:[#allocation33_spill] sm:$0xff] }
  0xd0   :  { %v430_v46 = vrot.slane %v205_v59, %v1612_v45 }
  0xd1   :  { %v350_v37 = vrot.slane %v189_v29, %v1612_v45 }
  0xd2   :  { %v431_v47 = vsel %vm351_vm2, %v430_v46, %v426_v17  ;;  %v2046_v46 = vld [vmem:[#allocation29_spill] sm:$0xff] }
  0xd3   :  { %v352_v61 = vsel %vm351_vm2, %v350_v37, %v345_v36  ;;  %v2047_v37 = vld [vmem:[#allocation40_spill] sm:$0xff]  ;;  %v2048_v36 = vld [vmem:[#allocation41_spill] sm:$0xff] }
  0xd4   :  { %v433_v35 = vsel %vm432_vm3, %v431_v47, %v352_v61 }
  0xd5   :  { %964 = vmatmul.mubr.f32.vlgmr.msra.gmra.mrb[0].mxu0 %v433_v35 }
 0x1a8   :  { %v501_v34 = vpop.f32.mrb[0].mxu0 }
 0x1a9   :  { %v505_v0 = vmax.f32 %v501_v34, 0.0  ;;  %v965_v25 = vpop.f32.mrb[1].mxu0  ;;  %v2049_v34 = vld [vmem:[#allocation36_spill] sm:$0xff] }
 0x1aa   :  { %v2050_v25 = vld [vmem:[#allocation37_spill] sm:$0xff] }
 0x1ab   :  { %999 = vmatmul.mubr.msk.f32.vlgmr.msra.gmra.mrb[0].mxu1 %vm522_vm1, %v505_v0 }
 0x27e   :  { %v640_v60 = vpop.f32.mrb[0].mxu1 }
 0x27f   :  { %v644_v56 = vsub.f32 0.0, %v640_v60  ;;  %v1000_v42 = vpop.f32.mrb[1].mxu1 }
 0x281   :  { %v645_v22 = vmul.f32 1.442695, %v644_v56  ;;  %v2051_v56 = vld [vmem:[#allocation48_spill] sm:$0xff] }
 0x283   :  { %1042 = vpow2.f32 %v645_v22  ;;  %v2052_v22 = vld [vmem:[#allocation49_spill] sm:$0xff] }
 0x28d   :  { %v1043_v45 = vpop.eup %1042 }
 0x28e   :  { %v647_v6 = vadd.f32 1.0, %v1043_v45 }
 0x290   :  { %1044 = vrcp.f32 %v647_v6 }
 0x29a   :  { %v1045_v41 = vpop.eup %1044 }
 0x29b   :  { %v653_v16 = vrot.slane %v1045_v41, %v652_v28  ;;  %v720_v40 = vrot.slane %v1045_v41, %v719_v44  ;;  %v2053_v41 = vld [vmem:[#allocation44_spill] sm:$0xff]  ;;  %v2054_v44 = vld [vmem:[#allocation45_spill] sm:$0xff] }
 0x29d   :  { %659 = vbcast.lane.b32.xlu1 %v653_v16, 264  ;;  %655 = vbcast.lane.b32.xlu0 %v653_v16, 256 }
 0x2a1   :  { %663 = vbcast.lane.b32.xlu1 %v653_v16, 272  ;;  %671 = vbcast.lane.b32.xlu0 %v653_v16, 288 }
 0x2a5   :  { %667 = vbcast.lane.b32.xlu1 %v653_v16, 280  ;;  %679 = vbcast.lane.b32.xlu0 %v653_v16, 304 }
 0x2a9   :  { %675 = vbcast.lane.b32.xlu1 %v653_v16, 296  ;;  %687 = vbcast.lane.b32.xlu0 %v653_v16, 320 }
 0x2ad   :  { %683 = vbcast.lane.b32.xlu1 %v653_v16, 312  ;;  %695 = vbcast.lane.b32.xlu0 %v653_v16, 336 }
 0x2b1   :  { %691 = vbcast.lane.b32.xlu1 %v653_v16, 328  ;;  %703 = vbcast.lane.b32.xlu0 %v653_v16, 352 }
 0x2b5   :  { %699 = vbcast.lane.b32.xlu1 %v653_v16, 344  ;;  %711 = vbcast.lane.b32.xlu0 %v653_v16, 368 }
 0x2b9   :  { %707 = vbcast.lane.b32.xlu1 %v653_v16, 360  ;;  %722 = vbcast.lane.b32.xlu0 %v720_v40, 256 }
 0x2bd   :  { %715 = vbcast.lane.b32.xlu1 %v653_v16, 376  ;;  %730 = vbcast.lane.b32.xlu0 %v720_v40, 272 }
 0x2c1   :  { %726 = vbcast.lane.b32.xlu1 %v720_v40, 264  ;;  %738 = vbcast.lane.b32.xlu0 %v720_v40, 288 }
 0x2c5   :  { %734 = vbcast.lane.b32.xlu1 %v720_v40, 280  ;;  %746 = vbcast.lane.b32.xlu0 %v720_v40, 304 }
 0x2c9   :  { %742 = vbcast.lane.b32.xlu1 %v720_v40, 296  ;;  %754 = vbcast.lane.b32.xlu0 %v720_v40, 320 }
 0x2cd   :  { %750 = vbcast.lane.b32.xlu1 %v720_v40, 312  ;;  %762 = vbcast.lane.b32.xlu0 %v720_v40, 336 }
 0x2d1   :  { %758 = vbcast.lane.b32.xlu1 %v720_v40, 328  ;;  %770 = vbcast.lane.b32.xlu0 %v720_v40, 352 }
 0x2d5   :  { %766 = vbcast.lane.b32.xlu1 %v720_v40, 344  ;;  %778 = vbcast.lane.b32.xlu0 %v720_v40, 368 }
 0x2d9   :  { %774 = vbcast.lane.b32.xlu1 %v720_v40, 360 }
 0x2dd   :  { %782 = vbcast.lane.b32.xlu1 %v720_v40, 376 }
 0x30f   :  { %v660_v31 = vpop.permute.xlu1 %659  ;;  %v656_v62 = vpop.permute.xlu0 %655 }
 0x310   :  { %v786_v1 = vmul.f32 %v660_v31, %v1106_v8  ;;  %v787_v49 = vmul.f32 %v660_v31, %v1111_v9  ;;  %v784_v43 = vmul.f32 %v656_v62, %v1082_v2  ;;  %v785_v13 = vmul.f32 %v656_v62, %v1089_v4  ;;  %v2055_v31 = vld [vmem:[#allocation2_spill] sm:$0xff] }
 0x312   :  { %850 = vst [vmem:[%s1930_s3 + $0x10] sm:$0xff] %v786_v1  ;;  %851 = vst [vmem:[%s1930_s3 + $0x18] sm:$0xff] %v787_v49  ;;  %v2056_v1 = vld [vmem:[#allocation3_spill] sm:$0xff] }
 0x313   :  { %848 = vst [vmem:[%s1930_s3] sm:$0xff] %v784_v43  ;;  %849 = vst [vmem:[%s1930_s3 + $0x8] sm:$0xff] %v785_v13  ;;  %v664_v8 = vpop.permute.xlu1 %663  ;;  %v672_v2 = vpop.permute.xlu0 %671 }
 0x314   :  { %v788_v4 = vmul.f32 %v664_v8, %v1130_v14  ;;  %v789_v9 = vmul.f32 %v664_v8, %v1135_v15  ;;  %v792_v19 = vmul.f32 %v672_v2, %v1178_v26  ;;  %v793_v51 = vmul.f32 %v672_v2, %v1183_v27  ;;  %v2057_v8 = vld [vmem:[#allocation52_spill] sm:$0xff] }
 0x316   :  { %852 = vst [vmem:[%s1930_s3 + $0x20] sm:$0xff] %v788_v4  ;;  %853 = vst [vmem:[%s1930_s3 + $0x28] sm:$0xff] %v789_v9  ;;  %v2058_v4 = vld [vmem:[#allocation53_spill] sm:$0xff] }
 0x317   :  { %856 = vst [vmem:[%s1930_s3 + $0x40] sm:$0xff] %v792_v19  ;;  %857 = vst [vmem:[%s1930_s3 + $0x48] sm:$0xff] %v793_v51  ;;  %v668_v14 = vpop.permute.xlu1 %667  ;;  %v680_v15 = vpop.permute.xlu0 %679  ;;  %v2059_v19 = vld [vmem:[#allocation6_spill] sm:$0xff] }
 0x318   :  { %v790_v26 = vmul.f32 %v668_v14, %v1154_v20  ;;  %v791_v27 = vmul.f32 %v668_v14, %v1159_v21  ;;  %v796_v50 = vmul.f32 %v680_v15, %v1226_v38  ;;  %v797_v48 = vmul.f32 %v680_v15, %v1231_v39  ;;  %v2037_v38 = vld [vmem:[#allocation14_spill] sm:$0xff]  ;;  %v2060_v14 = vld [vmem:[#allocation7_spill] sm:$0xff] }
 0x31a   :  { %854 = vst [vmem:[%s1930_s3 + $0x30] sm:$0xff] %v790_v26  ;;  %855 = vst [vmem:[%s1930_s3 + $0x38] sm:$0xff] %v791_v27 }
 0x31b   :  { %860 = vst [vmem:[%s1930_s3 + $0x60] sm:$0xff] %v796_v50  ;;  %861 = vst [vmem:[%s1930_s3 + $0x68] sm:$0xff] %v797_v48  ;;  %v676_v20 = vpop.permute.xlu1 %675  ;;  %v688_v21 = vpop.permute.xlu0 %687  ;;  %v2061_v50 = vld [vmem:[#allocation4_spill] sm:$0xff] }
 0x31c   :  { %v794_v39 = vmul.f32 %v676_v20, %v2037_v38  ;;  %v795_v18 = vmul.f32 %v676_v20, %v2038_v52  ;;  %v800_v33 = vmul.f32 %v688_v21, %v2039_v23  ;;  %v801_v57 = vmul.f32 %v688_v21, %v2040_v3  ;;  %v2062_v20 = vld [vmem:[#allocation5_spill] sm:$0xff]  ;;  %v2063_v38 = vld [vmem:[#allocation10_spill] sm:$0xff]  ;;  %v2064_v52 = vld [vmem:[#allocation11_spill] sm:$0xff] }
 0x31d   :  { %v2065_v3 = vld [vmem:[#allocation8_spill] sm:$0xff] }
 0x31e   :  { %858 = vst [vmem:[%s1930_s3 + $0x50] sm:$0xff] %v794_v39  ;;  %859 = vst [vmem:[%s1930_s3 + $0x58] sm:$0xff] %v795_v18 }
 0x31f   :  { %864 = vst [vmem:[%s1930_s3 + $0x80] sm:$0xff] %v800_v33  ;;  %865 = vst [vmem:[%s1930_s3 + $0x88] sm:$0xff] %v801_v57  ;;  %v684_v24 = vpop.permute.xlu1 %683  ;;  %v696_v32 = vpop.permute.xlu0 %695 }
 0x320   :  { %v798_v63 = vmul.f32 %v684_v24, %v2041_v5  ;;  %v799_v7 = vmul.f32 %v684_v24, %v2042_v30  ;;  %v804_v59 = vmul.f32 %v696_v32, %v2043_v55  ;;  %v805_v12 = vmul.f32 %v696_v32, %v2044_v10  ;;  %v2066_v24 = vld [vmem:[#allocation9_spill] sm:$0xff]  ;;  %v2067_v5 = vld [vmem:[#allocation16_spill] sm:$0xff] }
 0x321   :  { %v2068_v30 = vld [vmem:[#allocation17_spill] sm:$0xff]  ;;  %v2069_v10 = vld [vmem:[#allocation12_spill] sm:$0xff] }
 0x322   :  { %862 = vst [vmem:[%s1930_s3 + $0x70] sm:$0xff] %v798_v63  ;;  %863 = vst [vmem:[%s1930_s3 + $0x78] sm:$0xff] %v799_v7 }
 0x323   :  { %868 = vst [vmem:[%s1930_s3 + $0xa0] sm:$0xff] %v804_v59  ;;  %869 = vst [vmem:[%s1930_s3 + $0xa8] sm:$0xff] %v805_v12  ;;  %v692_v11 = vpop.permute.xlu1 %691  ;;  %v704_v29 = vpop.permute.xlu0 %703 }
 0x324   :  { %v802_v58 = vmul.f32 %v692_v11, %v2045_v53  ;;  %v803_v54 = vmul.f32 %v692_v11, %v2046_v46  ;;  %v808_v17 = vmul.f32 %v704_v29, %v2047_v37  ;;  %v809_v47 = vmul.f32 %v704_v29, %v2048_v36  ;;  %v2070_v11 = vld [vmem:[#allocation13_spill] sm:$0xff]  ;;  %v2071_v53 = vld [vmem:[#allocation22_spill] sm:$0xff]  ;;  %v2072_v46 = vld [vmem:[#allocation23_spill] sm:$0xff] }
 0x325   :  { %v2073_v36 = vld [vmem:[#allocation18_spill] sm:$0xff] }
 0x326   :  { %866 = vst [vmem:[%s1930_s3 + $0x90] sm:$0xff] %v802_v58  ;;  %867 = vst [vmem:[%s1930_s3 + $0x98] sm:$0xff] %v803_v54 }
 0x327   :  { %872 = vst [vmem:[%s1930_s3 + $0xc0] sm:$0xff] %v808_v17  ;;  %873 = vst [vmem:[%s1930_s3 + $0xc8] sm:$0xff] %v809_v47  ;;  %v700_v61 = vpop.permute.xlu1 %699  ;;  %v712_v35 = vpop.permute.xlu0 %711 }
 0x328   :  { %v806_v0 = vmul.f32 %v700_v61, %v2049_v34  ;;  %v807_v60 = vmul.f32 %v700_v61, %v2050_v25  ;;  %v812_v42 = vmul.f32 %v712_v35, %v2051_v56  ;;  %v813_v45 = vmul.f32 %v712_v35, %v2052_v22  ;;  %v2074_v61 = vld [vmem:[#allocation19_spill] sm:$0xff]  ;;  %v2075_v34 = vld [vmem:[#allocation30_spill] sm:$0xff] }
 0x329   :  { %v2076_v25 = vld [vmem:[#allocation31_spill] sm:$0xff]  ;;  %v2077_v22 = vld [vmem:[#allocation26_spill] sm:$0xff] }
 0x32a   :  { %870 = vst [vmem:[%s1930_s3 + $0xb0] sm:$0xff] %v806_v0  ;;  %871 = vst [vmem:[%s1930_s3 + $0xb8] sm:$0xff] %v807_v60 }
 0x32b   :  { %876 = vst [vmem:[%s1930_s3 + $0xe0] sm:$0xff] %v812_v42  ;;  %877 = vst [vmem:[%s1930_s3 + $0xe8] sm:$0xff] %v813_v45  ;;  %v708_v6 = vpop.permute.xlu1 %707  ;;  %v723_v28 = vpop.permute.xlu0 %722 }
 0x32c   :  { %v810_v16 = vmul.f32 %v708_v6, %v2053_v41  ;;  %v811_v40 = vmul.f32 %v708_v6, %v2054_v44  ;;  %v816_v62 = vmul.f32 %v723_v28, %v2055_v31  ;;  %v817_v49 = vmul.f32 %v723_v28, %v2056_v1  ;;  %v2078_v6 = vld [vmem:[#allocation27_spill] sm:$0xff]  ;;  %v2079_v41 = vld [vmem:[#allocation38_spill] sm:$0xff] }
 0x32d   :  { %v2080_v44 = vld [vmem:[#allocation39_spill] sm:$0xff]  ;;  %v2081_v1 = vld [vmem:[#allocation34_spill] sm:$0xff] }
 0x32e   :  { %874 = vst [vmem:[%s1930_s3 + $0xd0] sm:$0xff] %v810_v16  ;;  %875 = vst [vmem:[%s1930_s3 + $0xd8] sm:$0xff] %v811_v40 }
 0x32f   :  { %880 = vst [vmem:[%s1930_s3 + $0x100] sm:$0xff] %v816_v62  ;;  %881 = vst [vmem:[%s1930_s3 + $0x108] sm:$0xff] %v817_v49  ;;  %v716_v43 = vpop.permute.xlu1 %715  ;;  %v731_v13 = vpop.permute.xlu0 %730 }
 0x330   :  { %v814_v2 = vmul.f32 %v716_v43, %v2057_v8  ;;  %v815_v9 = vmul.f32 %v716_v43, %v2058_v4  ;;  %v820_v51 = vmul.f32 %v731_v13, %v2059_v19  ;;  %v821_v15 = vmul.f32 %v731_v13, %v2060_v14  ;;  %v2082_v43 = vld [vmem:[#allocation35_spill] sm:$0xff]  ;;  %v2083_v8 = vld [vmem:[#allocation46_spill] sm:$0xff] }
 0x331   :  { %v2084_v4 = vld [vmem:[#allocation47_spill] sm:$0xff] }
 0x332   :  { %878 = vst [vmem:[%s1930_s3 + $0xf0] sm:$0xff] %v814_v2  ;;  %879 = vst [vmem:[%s1930_s3 + $0xf8] sm:$0xff] %v815_v9 }
 0x333   :  { %884 = vst [vmem:[%s1930_s3 + $0x120] sm:$0xff] %v820_v51  ;;  %885 = vst [vmem:[%s1930_s3 + $0x128] sm:$0xff] %v821_v15  ;;  %v727_v26 = vpop.permute.xlu1 %726  ;;  %v739_v27 = vpop.permute.xlu0 %738  ;;  %v2085_v51 = vld [vmem:[#allocation42_spill] sm:$0xff]  ;;  %v2086_v15 = vld [vmem:[#allocation43_spill] sm:$0xff] }
 0x334   :  { %v818_v48 = vmul.f32 %v727_v26, %v2061_v50  ;;  %v819_v21 = vmul.f32 %v727_v26, %v2062_v20  ;;  %v824_v39 = vmul.f32 %v739_v27, %v2063_v38  ;;  %v825_v18 = vmul.f32 %v739_v27, %v2064_v52  ;;  %v2087_v50 = vld [vmem:[#allocation50_spill] sm:$0xff]  ;;  %v2088_v20 = vld [vmem:[#allocation51_spill] sm:$0xff] }
 0x336   :  { %882 = vst [vmem:[%s1930_s3 + $0x110] sm:$0xff] %v818_v48  ;;  %883 = vst [vmem:[%s1930_s3 + $0x118] sm:$0xff] %v819_v21 }
 0x337   :  { %888 = vst [vmem:[%s1930_s3 + $0x140] sm:$0xff] %v824_v39  ;;  %889 = vst [vmem:[%s1930_s3 + $0x148] sm:$0xff] %v825_v18  ;;  %v735_v23 = vpop.permute.xlu1 %734  ;;  %v747_v33 = vpop.permute.xlu0 %746 }
 0x338   :  { %v822_v57 = vmul.f32 %v735_v23, %v2065_v3  ;;  %v823_v32 = vmul.f32 %v735_v23, %v2066_v24  ;;  %v828_v63 = vmul.f32 %v747_v33, %v2067_v5  ;;  %v829_v7 = vmul.f32 %v747_v33, %v2068_v30 }
 0x33a   :  { %886 = vst [vmem:[%s1930_s3 + $0x130] sm:$0xff] %v822_v57  ;;  %887 = vst [vmem:[%s1930_s3 + $0x138] sm:$0xff] %v823_v32 }
 0x33b   :  { %892 = vst [vmem:[%s1930_s3 + $0x160] sm:$0xff] %v828_v63  ;;  %893 = vst [vmem:[%s1930_s3 + $0x168] sm:$0xff] %v829_v7  ;;  %v743_v55 = vpop.permute.xlu1 %742  ;;  %v755_v59 = vpop.permute.xlu0 %754 }
 0x33c   :  { %v826_v12 = vmul.f32 %v743_v55, %v2069_v10  ;;  %v827_v29 = vmul.f32 %v743_v55, %v2070_v11  ;;  %v832_v58 = vmul.f32 %v755_v59, %v2071_v53  ;;  %v833_v54 = vmul.f32 %v755_v59, %v2072_v46 }
 0x33e   :  { %890 = vst [vmem:[%s1930_s3 + $0x150] sm:$0xff] %v826_v12  ;;  %891 = vst [vmem:[%s1930_s3 + $0x158] sm:$0xff] %v827_v29 }
 0x33f   :  { %896 = vst [vmem:[%s1930_s3 + $0x180] sm:$0xff] %v832_v58  ;;  %897 = vst [vmem:[%s1930_s3 + $0x188] sm:$0xff] %v833_v54  ;;  %v751_v37 = vpop.permute.xlu1 %750  ;;  %v763_v17 = vpop.permute.xlu0 %762 }
 0x340   :  { %v830_v47 = vmul.f32 %v751_v37, %v2073_v36  ;;  %v831_v35 = vmul.f32 %v751_v37, %v2074_v61  ;;  %v836_v0 = vmul.f32 %v763_v17, %v2075_v34  ;;  %v837_v60 = vmul.f32 %v763_v17, %v2076_v25 }
 0x342   :  { %894 = vst [vmem:[%s1930_s3 + $0x170] sm:$0xff] %v830_v47  ;;  %895 = vst [vmem:[%s1930_s3 + $0x178] sm:$0xff] %v831_v35 }
 0x343   :  { %900 = vst [vmem:[%s1930_s3 + $0x1a0] sm:$0xff] %v836_v0  ;;  %901 = vst [vmem:[%s1930_s3 + $0x1a8] sm:$0xff] %v837_v60  ;;  %v759_v56 = vpop.permute.xlu1 %758  ;;  %v771_v42 = vpop.permute.xlu0 %770 }
 0x344   :  { %v834_v45 = vmul.f32 %v759_v56, %v2077_v22  ;;  %v835_v28 = vmul.f32 %v759_v56, %v2078_v6  ;;  %v840_v16 = vmul.f32 %v771_v42, %v2079_v41  ;;  %v841_v40 = vmul.f32 %v771_v42, %v2080_v44 }
 0x346   :  { %898 = vst [vmem:[%s1930_s3 + $0x190] sm:$0xff] %v834_v45  ;;  %899 = vst [vmem:[%s1930_s3 + $0x198] sm:$0xff] %v835_v28 }
 0x347   :  { %904 = vst [vmem:[%s1930_s3 + $0x1c0] sm:$0xff] %v840_v16  ;;  %905 = vst [vmem:[%s1930_s3 + $0x1c8] sm:$0xff] %v841_v40  ;;  %v767_v31 = vpop.permute.xlu1 %766  ;;  %v779_v62 = vpop.permute.xlu0 %778 }
 0x348   :  { %v838_v49 = vmul.f32 %v767_v31, %v2081_v1  ;;  %v839_v13 = vmul.f32 %v767_v31, %v2082_v43  ;;  %v844_v2 = vmul.f32 %v779_v62, %v2083_v8  ;;  %v845_v9 = vmul.f32 %v779_v62, %v2084_v4 }
 0x34a   :  { %902 = vst [vmem:[%s1930_s3 + $0x1b0] sm:$0xff] %v838_v49  ;;  %903 = vst [vmem:[%s1930_s3 + $0x1b8] sm:$0xff] %v839_v13 }
 0x34b   :  { %908 = vst [vmem:[%s1930_s3 + $0x1e0] sm:$0xff] %v844_v2  ;;  %909 = vst [vmem:[%s1930_s3 + $0x1e8] sm:$0xff] %v845_v9  ;;  %v775_v19 = vpop.permute.xlu1 %774 }
 0x34c   :  { %v842_v14 = vmul.f32 %v775_v19, %v2085_v51  ;;  %v843_v26 = vmul.f32 %v775_v19, %v2086_v15 }
 0x34e   :  { %906 = vst [vmem:[%s1930_s3 + $0x1d0] sm:$0xff] %v842_v14  ;;  %907 = vst [vmem:[%s1930_s3 + $0x1d8] sm:$0xff] %v843_v26 }
 0x34f   :  { %v783_v27 = vpop.permute.xlu1 %782 }
 0x350   :  { %v846_v48 = vmul.f32 %v783_v27, %v2087_v50  ;;  %v847_v21 = vmul.f32 %v783_v27, %v2088_v20 }
 0x352   :  { %910 = vst [vmem:[%s1930_s3 + $0x1f0] sm:$0xff] %v846_v48  ;;  %911 = vst [vmem:[%s1930_s3 + $0x1f8] sm:$0xff] %v847_v21 }

</bundles_post_ra>
